<compile_context>
chip_gen: v7x
topology: tpu7x:2x2x1
jax: 0.10.0
libtpu: 0.0.40
codegen_flags: <defaults>
</compile_context>

<pallas_src>
import jax
import jax.numpy as jnp
from jax.experimental import pallas as pl
from jax.experimental.pallas import tpu as pltpu

IN = 2        # fc1 in_features
HIDDEN = 3    # fc1 out_features
LANES = 128
SUBLANES = 8


def mlp_kernel(x_ref, w1_ref, b1_ref, w2_ref, b2_ref, o_ref):
    # x_ref : VMEM [2, TR, 128]   (feature, batch-rows, batch-lanes)
    # w1_ref: SMEM [2, 3]   b1_ref: SMEM [3]
    # w2_ref: SMEM [3, 1]   b2_ref: SMEM [1]
    # o_ref : VMEM [TR, 128]
    x0 = x_ref[0]                      # [TR, 128] view-load, no extra full-tile temp
    x1 = x_ref[1]                      # [TR, 128]

    # Unrolled over the 3 hidden units: pure VPU broadcast multiply-adds.
    acc = None
    for j in range(HIDDEN):
        h = x0 * w1_ref[0, j] + x1 * w1_ref[1, j] + b1_ref[j]   # fc1 row j
        h = jnp.maximum(h, 0.0)                                  # ReLU
        term = h * w2_ref[j, 0]                                  # fc2 contribution
        acc = term if acc is None else acc + term
    o_ref[...] = (acc + b2_ref[0]).astype(o_ref.dtype)           # dense [TR,128] store


def torch_mlp_forward(x_fm, w1, b1, w2, b2, *, tile_b=128 * 1024):
    """Fused MLP forward.

    x_fm: feature-major input [2, B] (callers with batch-major data should fuse
          the transpose into the producer — do NOT add a copy here).
    w1: [2, 3], b1: [3], w2: [3, 1], b2: [1]
    returns: [B, 1]  (same as the torch module)
    """
    assert x_fm.shape[0] == IN
    B = x_fm.shape[1]

    # Batch granule: one full (8,128) slab.
    granule = SUBLANES * LANES                      # 1024 elements
    # Tile rows (sublane-rows of 128 lanes each), multiple of 8.
    tile_rows = max(SUBLANES, (tile_b // LANES) // SUBLANES * SUBLANES)

    rows_total = pl.cdiv(B, granule) * (granule // LANES)
    tile_rows = min(tile_rows, rows_total)
    grid_n = pl.cdiv(rows_total, tile_rows)
    rows_total = grid_n * tile_rows
    bp = rows_total * LANES

    if bp != B:
        # Only hit when B is not already a multiple of the tile; padded lanes
        # compute relu(b1)@w2 + b2 and are sliced off below.
        x_fm = jnp.pad(x_fm, ((0, 0), (0, bp - B)))

    # Free reshape of contiguous data: [2, bp] -> [2, rows_total, 128].
    x3 = x_fm.reshape(IN, rows_total, LANES)

    smem = pl.BlockSpec(memory_space=pltpu.MemorySpace.SMEM)

    out = pl.pallas_call(
        mlp_kernel,
        out_shape=jax.ShapeDtypeStruct((rows_total, LANES), jnp.float32),
        grid_spec=pl.GridSpec(
            grid=(grid_n,),
            in_specs=[
                pl.BlockSpec((IN, tile_rows, LANES), lambda i: (0, i, 0)),  # x slab
                smem,   # w1 (scalars)
                smem,   # b1
                smem,   # w2
                smem,   # b2
            ],
            out_specs=pl.BlockSpec((tile_rows, LANES), lambda i: (i, 0)),
        ),
        compiler_params=pltpu.CompilerParams(
            # Batch tiles are independent -> shard across the 2 TensorCores on v7x.
            dimension_semantics=("parallel",),
        ),
    )(x3, w1, b1, w2, b2)

    # Free reshape of contiguous output + slice off padding -> [B, 1].
    return out.reshape(bp)[:B].reshape(B, 1)


def init_params(key):
    # Deterministic init mirroring PyTorch Linear's U(-1/sqrt(fan_in), 1/sqrt(fan_in)).
    k1, k2, k3, k4 = jax.random.split(key, 4)
    bound1 = 1.0 / jnp.sqrt(2.0)   # fc1: in_features=2
    bound2 = 1.0 / jnp.sqrt(3.0)   # fc2: in_features=3
    w1 = jax.random.uniform(k1, (IN, HIDDEN), jnp.float32, -bound1, bound1)   # fc1.weight.T
    b1 = jax.random.uniform(k2, (HIDDEN,), jnp.float32, -bound1, bound1)      # fc1.bias
    w2 = jax.random.uniform(k3, (HIDDEN, 1), jnp.float32, -bound2, bound2)    # fc2.weight.T
    b2 = jax.random.uniform(k4, (1,), jnp.float32, -bound2, bound2)           # fc2.bias
    return w1, b1, w2, b2


if __name__ == "__main__":
    key = jax.random.PRNGKey(0)
    kx, kp = jax.random.split(key)

    # Small batch that still exercises the tiling path: 2048 lanes, tile of 1024
    # lanes -> grid=(2,), full (8,128) slabs, no padding copy.
    B = 2048
    x_fm = jax.random.normal(kx, (IN, B), jnp.float32)   # feature-major [2, B]
    w1, b1, w2, b2 = init_params(kp)

    out = jax.block_until_ready(
        torch_mlp_forward(x_fm, w1, b1, w2, b2, tile_b=1024)
    )

    # Reference check in plain JAX (same math as the torch module, batch-major).
    x_bm = x_fm.T                                         # [B, 2]
    ref = jnp.maximum(x_bm @ w1 + b1, 0.0) @ w2 + b2      # [B, 1]
    assert out.shape == (B, 1)
    assert jnp.allclose(out, ref, atol=1e-5, rtol=1e-5)

    print("KERNEL_OK")
</pallas_src>

<mosaic_0001>
module attributes {stable_mosaic.version = 11 : i64} {
  func.func @mlp_kernel(%arg0: i32, %arg1: memref<2x8x128xf32, #tpu.memory_space<vmem>>, %arg2: memref<2x3xf32, #tpu.memory_space<smem>>, %arg3: memref<3xf32, #tpu.memory_space<smem>>, %arg4: memref<3x1xf32, #tpu.memory_space<smem>>, %arg5: memref<1xf32, #tpu.memory_space<smem>>, %arg6: memref<8x128xf32, #tpu.memory_space<vmem>>) attributes {dimension_semantics = [#tpu.dimension_semantics<parallel>], iteration_bounds = array<i64: 2>, scalar_prefetch = 0 : i64, scratch_operands = 0 : i64, tpu.core_type = #tpu.core_type<tc>, window_params = [{transform_indices = @transform_0, window_bounds = array<i64: 2, 8, 128>}, {transform_indices = @transform_1, window_bounds = array<i64: 2, 3>}, {transform_indices = @transform_2, window_bounds = array<i64: 3>}, {transform_indices = @transform_3, window_bounds = array<i64: 3, 1>}, {transform_indices = @transform_4, window_bounds = array<i64: 1>}, {transform_indices = @transform_5, window_bounds = array<i64: 8, 128>}]} {
    %c0 = arith.constant 0 : index
    %c0_0 = arith.constant 0 : index
    %c0_1 = arith.constant 0 : index
    %0 = vector.load %arg1[%c0, %c0_0, %c0_1] : memref<2x8x128xf32, #tpu.memory_space<vmem>>, vector<1x8x128xf32>
    %1 = vector.shape_cast %0 : vector<1x8x128xf32> to vector<8x128xf32>
    %c1 = arith.constant 1 : index
    %c0_2 = arith.constant 0 : index
    %c0_3 = arith.constant 0 : index
    %2 = vector.load %arg1[%c1, %c0_2, %c0_3] : memref<2x8x128xf32, #tpu.memory_space<vmem>>, vector<1x8x128xf32>
    %3 = vector.shape_cast %2 : vector<1x8x128xf32> to vector<8x128xf32>
    %c0_4 = arith.constant 0 : index
    %c0_5 = arith.constant 0 : index
    %4 = memref.load %arg2[%c0_4, %c0_5] : memref<2x3xf32, #tpu.memory_space<smem>>
    %5 = vector.broadcast %4 : f32 to vector<8x128xf32>
    %6 = arith.mulf %1, %5 : vector<8x128xf32>
    %c1_6 = arith.constant 1 : index
    %c0_7 = arith.constant 0 : index
    %7 = memref.load %arg2[%c1_6, %c0_7] : memref<2x3xf32, #tpu.memory_space<smem>>
    %8 = vector.broadcast %7 : f32 to vector<8x128xf32>
    %9 = arith.mulf %3, %8 : vector<8x128xf32>
    %10 = arith.addf %6, %9 : vector<8x128xf32>
    %c0_8 = arith.constant 0 : index
    %11 = memref.load %arg3[%c0_8] : memref<3xf32, #tpu.memory_space<smem>>
    %12 = vector.broadcast %11 : f32 to vector<8x128xf32>
    %13 = arith.addf %10, %12 : vector<8x128xf32>
    %cst = arith.constant 0.000000e+00 : f32
    %14 = vector.broadcast %cst : f32 to vector<8x128xf32>
    %15 = arith.maximumf %13, %14 : vector<8x128xf32>
    %c0_9 = arith.constant 0 : index
    %c0_10 = arith.constant 0 : index
    %16 = memref.load %arg4[%c0_9, %c0_10] : memref<3x1xf32, #tpu.memory_space<smem>>
    %17 = vector.broadcast %16 : f32 to vector<8x128xf32>
    %18 = arith.mulf %15, %17 : vector<8x128xf32>
    %c0_11 = arith.constant 0 : index
    %c1_12 = arith.constant 1 : index
    %19 = memref.load %arg2[%c0_11, %c1_12] : memref<2x3xf32, #tpu.memory_space<smem>>
    %20 = vector.broadcast %19 : f32 to vector<8x128xf32>
    %21 = arith.mulf %1, %20 : vector<8x128xf32>
    %c1_13 = arith.constant 1 : index
    %c1_14 = arith.constant 1 : index
    %22 = memref.load %arg2[%c1_13, %c1_14] : memref<2x3xf32, #tpu.memory_space<smem>>
    %23 = vector.broadcast %22 : f32 to vector<8x128xf32>
    %24 = arith.mulf %3, %23 : vector<8x128xf32>
    %25 = arith.addf %21, %24 : vector<8x128xf32>
    %c1_15 = arith.constant 1 : index
    %26 = memref.load %arg3[%c1_15] : memref<3xf32, #tpu.memory_space<smem>>
    %27 = vector.broadcast %26 : f32 to vector<8x128xf32>
    %28 = arith.addf %25, %27 : vector<8x128xf32>
    %cst_16 = arith.constant 0.000000e+00 : f32
    %29 = vector.broadcast %cst_16 : f32 to vector<8x128xf32>
    %30 = arith.maximumf %28, %29 : vector<8x128xf32>
    %c1_17 = arith.constant 1 : index
    %c0_18 = arith.constant 0 : index
    %31 = memref.load %arg4[%c1_17, %c0_18] : memref<3x1xf32, #tpu.memory_space<smem>>
    %32 = vector.broadcast %31 : f32 to vector<8x128xf32>
    %33 = arith.mulf %30, %32 : vector<8x128xf32>
    %34 = arith.addf %18, %33 : vector<8x128xf32>
    %c0_19 = arith.constant 0 : index
    %c2 = arith.constant 2 : index
    %35 = memref.load %arg2[%c0_19, %c2] : memref<2x3xf32, #tpu.memory_space<smem>>
    %36 = vector.broadcast %35 : f32 to vector<8x128xf32>
    %37 = arith.mulf %1, %36 : vector<8x128xf32>
    %c1_20 = arith.constant 1 : index
    %c2_21 = arith.constant 2 : index
    %38 = memref.load %arg2[%c1_20, %c2_21] : memref<2x3xf32, #tpu.memory_space<smem>>
    %39 = vector.broadcast %38 : f32 to vector<8x128xf32>
    %40 = arith.mulf %3, %39 : vector<8x128xf32>
    %41 = arith.addf %37, %40 : vector<8x128xf32>
    %c2_22 = arith.constant 2 : index
    %42 = memref.load %arg3[%c2_22] : memref<3xf32, #tpu.memory_space<smem>>
    %43 = vector.broadcast %42 : f32 to vector<8x128xf32>
    %44 = arith.addf %41, %43 : vector<8x128xf32>
    %cst_23 = arith.constant 0.000000e+00 : f32
    %45 = vector.broadcast %cst_23 : f32 to vector<8x128xf32>
    %46 = arith.maximumf %44, %45 : vector<8x128xf32>
    %c2_24 = arith.constant 2 : index
    %c0_25 = arith.constant 0 : index
    %47 = memref.load %arg4[%c2_24, %c0_25] : memref<3x1xf32, #tpu.memory_space<smem>>
    %48 = vector.broadcast %47 : f32 to vector<8x128xf32>
    %49 = arith.mulf %46, %48 : vector<8x128xf32>
    %50 = arith.addf %34, %49 : vector<8x128xf32>
    %c0_26 = arith.constant 0 : index
    %51 = memref.load %arg5[%c0_26] : memref<1xf32, #tpu.memory_space<smem>>
    %52 = vector.broadcast %51 : f32 to vector<8x128xf32>
    %53 = arith.addf %50, %52 : vector<8x128xf32>
    %c0_27 = arith.constant 0 : index
    %c0_28 = arith.constant 0 : index
    %54 = vector.load %arg6[%c0_27, %c0_28] : memref<8x128xf32, #tpu.memory_space<vmem>>, vector<8x128xf32>
    tpu.vector_store %arg6[%c0_27, %c0_28], %53 {strides = array<i32>} : memref<8x128xf32, #tpu.memory_space<vmem>>, vector<8x128xf32>,
    return
  }
  func.func @transform_0(%arg0: i32) -> (i32, i32, i32) {
    %c0_i32 = arith.constant 0 : i32
    %c0_i32_0 = arith.constant 0 : i32
    %c0_i32_1 = arith.constant 0 : i32
    return %c0_i32, %arg0, %c0_i32_0 : i32, i32, i32
  }
  func.func @transform_1(%arg0: i32) -> (i32, i32) {
    %c0_i32 = arith.constant 0 : i32
    %c0_i32_0 = arith.constant 0 : i32
    %c0_i32_1 = arith.constant 0 : i32
    return %c0_i32, %c0_i32_0 : i32, i32
  }
  func.func @transform_2(%arg0: i32) -> i32 {
    %c0_i32 = arith.constant 0 : i32
    %c0_i32_0 = arith.constant 0 : i32
    return %c0_i32 : i32
  }
  func.func @transform_3(%arg0: i32) -> (i32, i32) {
    %c0_i32 = arith.constant 0 : i32
    %c0_i32_0 = arith.constant 0 : i32
    %c0_i32_1 = arith.constant 0 : i32
    return %c0_i32, %c0_i32_0 : i32, i32
  }
  func.func @transform_4(%arg0: i32) -> i32 {
    %c0_i32 = arith.constant 0 : i32
    %c0_i32_0 = arith.constant 0 : i32
    return %c0_i32 : i32
  }
  func.func @transform_5(%arg0: i32) -> (i32, i32) {
    %c0_i32 = arith.constant 0 : i32
    %c0_i32_0 = arith.constant 0 : i32
    return %arg0, %c0_i32 : i32, i32
  }
}

</mosaic_0001>

<bundles_post_ra>
// kernel: tpu_custom_call.1
= control target key start
LH: loop header
LB: loop body
LE: loop exit
PB: predicated region body
PF: predicated region fallthrough
CT: control target
= control target key end

     0   :  { %s962_s0 = inlined_call_operand.hbm [shape: f32[2,16,128], index: 0, kind: input, shape index: {}]   ;;  %s963_s1 = inlined_call_operand.vmem [shape: f32[2,3], index: 1, kind: input, shape index: {}]   ;;  %s964_s2 = inlined_call_operand.vmem [shape: f32[3], index: 2, kind: input, shape index: {}]   ;;  %s965_s3 = inlined_call_operand.vmem [shape: f32[3,1], index: 3, kind: input, shape index: {}]   ;;  %s966_s4 = inlined_call_operand.<no memory space> [shape: f32[1], index: 4, kind: input, shape index: {}]   ;;  %s967_s5 = inlined_call_operand.hbm [shape: f32[16,128], index: 5, kind: output, shape index: {}]  }
   0x1   :  { %10 = sst [smem:[#allocation2]] %s966_s4 }
   0x2   :  { %11 = vsyncpa [#allocation4], 0 }
   0x3   :  { %13 = vsyncpa [#allocation4 + $0x1], 0 }
   0x4   :  { %14 = vsyncpa [#allocation6], 0 }
   0x5   :  { %15 = vsyncpa [#allocation9], 0 }
   0x6   :  { %16 = vsyncpa [#allocation5], 0 }
   0x7   :  { %18 = vsyncpa [#allocation5 + $0x1], 0  ;;  %s748_s20 = smov 0   ;;  %s750_s21 = smov 0  }
   0x8   :  { %s752_s22 = smov 0   ;;  %s754_s23 = smov 0  }
   0x9 LB: > { %s769_s4 = sadd.s32 4294967295, %s705_s23   ;;  %s448_s24 = sadd.s32 4294967294, %s705_s23   ;;  %s705_s23 = sphi %s754_s23, %s993_s23   ;;  %s701_s22 = sphi %s752_s22, %s992_s22   ;;  %s697_s21 = sphi %s750_s21, %s991_s21   ;;  %s693_s20 = sphi %s748_s20, %s990_s20  }
   0xa   : > { %s773_s25 = sadd.s32 1, %s705_s23   ;;  %s31_s26 = sadd.s32 1, %s701_s22 }
   0xb   : > { %s28_s27 = ssub.s32 %s705_s23, %s773_s25  ;;  %p38_p0 = scmp.ne.s32.totalorder %s701_s22, %s697_s21 }
   0xc   : > { %p29_p1 = scmp.eq.s32.totalorder %s28_s27, 0  ;;  %p39_p2 = scmp.eq.s32.totalorder %s705_s23, 0 }
   0xd   : > { %p44_p3 = scmp.ne.s32.totalorder %s697_s21, %s693_s20  ;;  %p968_p4 = scmp.eq.s32.totalorder %s769_s4, 0 }
   0xe   : > { %s785_s28 = scalar_select %p29_p1, %s701_s22, %s31_s26  }
   0xf   : > { %p787_p5 = por %p39_p2, %p38_p0  ;;  %p793_p6 = por %p968_p4, %p44_p3 }
  0x10   : > { %p152_p7 = scmp.eq.s32.totalorder %s769_s4, 1  ;;  %p158_p8 = scmp.eq.s32.totalorder %s448_s24, 1 }
  0x11   : > { %s974_s30 = scalar_select %p793_p6, 1, 0 }
  0x12   : > { %p449_p9 = scmp.ge.s32.totalorder %s705_s23, 1  ;;  %p165_p10 = scmp.lt.s32.totalorder %s705_s23, 3 }
  0x13   : > { %p800_p11 = por %p152_p7, %p38_p0  ;;  %p804_p12 = por %p158_p8, %p44_p3 }
  0x14   : > { %p808_p13 = pnand %p449_p9, %p165_p10  ;;  %s189_s11 = sshll.u32 %s964_s2, 4  ;;  %s190_s11 = int_to_ptr.vmem [resolvable:$true] %s189_s11 }
  0x15   : > { %s975_s6 = scalar_select %p800_p11, 1, 0 }
  0x16   : > { %s976_s7 = scalar_select %p804_p12, 1, 0 }
  0x17   : > { %s977_s8 = scalar_select %p808_p13, 1, 0 }
  0x18   : > { %p492_p1 = pneg %p808_p13  ;;  %p513_p2 = scmp.lt.s32.totalorder %s705_s23, 2 }
  0x19   : > { %s178_s15 = sshll.u32 %s963_s1, 4  ;;  %s556_s17 = scalar_lea.vmem %s190_s11, 16  ;;  %s179_s15 = int_to_ptr.vmem [resolvable:$true] %s178_s15 }
  0x1a   : > { %p821_p7 = pnand %p492_p1, %p968_p4  ;;  %p830_p3 = pnand %p513_p2, %p787_p5 }
  0x1b   : > { %p557_p8 = scmp.ne.s32.totalorder %s190_s11, %s556_s17  ;;  %p564_p0 = scmp.lt.s32.totalorder %s190_s11, %s190_s11 }
  0x1c   : > { %s979_s16 = scalar_select %p830_p3, 1, 0 }
  0x1d   : > { %p558_p9 = pneg %p821_p7  ;;  %p565_p4 = scmp.lt.s32.totalorder %s556_s17, %s556_s17 }
  0x1f   : > { %p559_p10 = pnand %p558_p9, %p557_p8  ;;  %p566_p12 = por %p565_p4, %p564_p0 }
  0x21   : > { %p560_p1 = pneg %p559_p10 }
  0x23   : > { %p567_p11 = pnand %p566_p12, %p560_p1 }
  0x25   : > { %570 = shalt.err (!%p567_p11)
}
  0x26   : > { %s707_s18 = smov [#allocation8]   ;;  %s200_s26 = sshll.u32 %s965_s3, 4  ;;  %s201_s26 = int_to_ptr.vmem [resolvable:$true] %s200_s26 }
  0x27   : > { %498 = dma.vmem_to_smem (!%p821_p7), %s190_s11, 16, %s707_s18, [#allocation9]  }
  0x28   : > { %s571_s27 = scalar_lea.vmem %s179_s15, 32  ;;  %p579_p10 = scmp.lt.s32.totalorder %s179_s15, %s179_s15 }
  0x29   : > { %p572_p5 = scmp.ne.s32.totalorder %s179_s15, %s571_s27  ;;  %p580_p6 = scmp.lt.s32.totalorder %s571_s27, %s571_s27 }
  0x2b   : > { %p574_p2 = pnand %p572_p5, %p558_p9  ;;  %p581_p4 = por %p580_p6, %p579_p10 }
  0x2d   : > { %p575_p8 = pneg %p574_p2 }
  0x2f   : > { %p582_p12 = pnand %p581_p4, %p575_p8 }
  0x31   : > { %585 = shalt.err (!%p582_p12)
}
  0x32   : > { %s708_s29 = smov [#allocation7]   ;;  %s586_s9 = scalar_lea.vmem %s201_s26, 64 }
  0x33   : > { %495 = dma.vmem_to_smem (!%p821_p7), %s179_s15, 32, %s708_s29, [#allocation6]  }
  0x34   : > { %p587_p11 = scmp.ne.s32.totalorder %s201_s26, %s586_s9  ;;  %p594_p13 = scmp.lt.s32.totalorder %s201_s26, %s201_s26 }
  0x35   : > { %p595_p5 = scmp.lt.s32.totalorder %s586_s9, %s586_s9 }
  0x36   : > { %p589_p0 = pnand %p587_p11, %p558_p9 }
  0x37   : > { %p596_p2 = por %p595_p5, %p594_p13 }
  0x38   : > { %p590_p1 = pneg %p589_p0 }
  0x3a   : > { %p597_p3 = pnand %p596_p2, %p590_p1 }
  0x3c   : > { %600 = shalt.err (!%p597_p3)
}
  0x3d   : > { %s709_s10 = smov [#allocation10]   ;;  %s214_s11 = sand.u32 1, %s701_s22  }
  0x3e   : > { %501 = dma.vmem_to_smem (!%p821_p7), %s201_s26, 64, %s709_s10, [#allocation9]  }
  0x3f   : > { %s455_s13 = sshll.u32 %s705_s23, 7  ;;  %s454_s14 = sshll.u32 %s214_s11, 4 }
  0x40   : > { %s859_s18 = scalar_lea.hbm %s962_s0, %s455_s13  ;;  %s218_s19 = scalar_lea.vmem [#allocation3], %s454_s14 }
  0x41   : > { %s224_s24 = sshll.u32 %s218_s19, 4  ;;  %s863_s12 = scalar_lea.sflag [#allocation4], %s214_s11  ;;  %s861_s24 = int_to_ptr.vmem [resolvable:$true] %s224_s24 }
  0x42   : > { %s601_s27 = scalar_lea.hbm %s859_s18, 256  ;;  %p980_p13 = scmp.ne.s32.totalorder %s979_s16, 0 }
  0x43   : > { %p602_p6 = scmp.ne.s32.totalorder %s859_s18, %s601_s27  ;;  %s606_s9 = scalar_lea.hbm %s962_s0, 512 }
  0x44   : > { %p603_p7 = pneg %p980_p13  ;;  %p607_p8 = scmp.lt.u32.totalorder %s859_s18, %s962_s0 }
  0x45   : > { %p608_p10 = scmp.lt.u32.totalorder %s606_s9, %s601_s27  ;;  %p610_p12 = scmp.lt.u32.totalorder %s601_s27, %s859_s18 }
  0x46   : > { %p604_p3 = pnand %p603_p7, %p602_p6 }
  0x47   : > { %p609_p4 = por %p608_p10, %p607_p8 }
  0x48   : > { %p605_p9 = pneg %p604_p3 }
  0x49   : > { %p611_p11 = por %p610_p12, %p609_p4 }
  0x4b   : > { %p612_p0 = pnand %p611_p11, %p605_p9 }
  0x4d   : > { %615 = shalt.err (!%p612_p0)
}
  0x4e   : > { %s616_s11 = scalar_lea.vmem %s861_s24, 256  ;;  %s710_s14 = smov [#allocation3]  }
  0x4f   : > { %p617_p1 = scmp.ne.s32.totalorder %s861_s24, %s616_s11  ;;  %s621_s15 = sshll.u32 %s710_s14, 4  ;;  %s622_s15 = int_to_ptr.vmem [resolvable:$false] %s621_s15 }
  0x50   : > { %s623_s17 = scalar_lea.vmem %s622_s15, 512  ;;  %p624_p6 = scmp.lt.s32.totalorder %s861_s24, %s622_s15 }
  0x51   : > { %p619_p5 = pnand %p617_p1, %p603_p7  ;;  %p625_p3 = scmp.lt.s32.totalorder %s623_s17, %s616_s11 }
  0x53   : > { %p620_p2 = pneg %p619_p5  ;;  %p626_p8 = por %p625_p3, %p624_p6 }
  0x55   : > { %p627_p10 = pnand %p626_p8, %p620_p2 }
  0x57   : > { %630 = shalt.err (!%p627_p10)
}
  0x58   : > { %s711_s19 = smov 256   ;;  %s712_s27 = smov 128  }
  0x59   : > { %s713_s26 = smov 8   ;;  %p981_p7 = scmp.ne.s32.totalorder %s977_s8, 0 }
  0x5a   : > { %505 = dma.hbm_to_vmem [thread:$0]  (!%p980_p13), %s859_s18, 256, %s861_s24, %s863_s12, %s711_s19, %s712_s27, %s713_s26  }
  0x5b   : > { %236 = sbr.rel (%p981_p7) target bundleno = 147 (0x93), region = 40  ;;  %s894_s29 = sand.u32 (!%p981_p7), 1, %s697_s21  }
  0x5c   : > { %s457_s9 = sshll.u32 (!%p981_p7), %s894_s29, 4  ;;  %s239_s10 = scalar_lea.sflag (!%p981_p7), [#allocation4], %s894_s29 }
  0x5d   : > { %s242_s13 = scalar_lea.vmem (!%p981_p7), [#allocation3], %s457_s9  ;;  %p982_p9 = scmp.ne.s32.totalorder (!%p981_p7), %s974_s30, 0 }
  0x62   : > { %676 = dma.done.wait (%p982_p9), %s239_s10, 256  }
  0x63   : > { %678 = vsyncadd (%p982_p9), %s239_s10, 4294967040  ;;  %p983_p4 = scmp.eq.s32.totalorder %s769_s4, 0 }
  0x65   : > { %680 = dma.done.wait (%p983_p4), [#allocation6], 32   ;;  %p984_p13 = pmov %p983_p4 }
  0x66   : > { %p985_p12 = pmov %p983_p4 }
  0x67   : > { %682 = vsyncadd (%p984_p13), [#allocation6], 4294967264 }
  0x68   : > { %684 = dma.done.wait (%p985_p12), [#allocation9], 80   ;;  %p986_p11 = pmov %p983_p4 }
  0x6a   : > { %686 = vsyncadd (%p986_p11), [#allocation9], 4294967216 }
  0x6b   : > { %259 = sfence }
  0x6c   : > { %s285_s8 = sld [smem:[#allocation7]]  ;;  %s464_s24 = sld [smem:[#allocation7 + $0x1]]  ;;  %v282_v0 = vld [vmem:[%s242_s13] sm:$0xff]  ;;  %v462_v1 = vld [vmem:[%s242_s13 + $0x8] sm:$0xff] }
  0x6d   : > { %s463_s16 = sld [smem:[#allocation7 + $0x80]]  ;;  %s465_s12 = sld [smem:[#allocation7 + $0x81]] }
  0x6e   : > { %s292_s18 = sld [smem:[#allocation8]]  ;;  %s466_s11 = sld [smem:[#allocation8 + $0x1]] }
  0x6f   : > { %s910_s30 = sld [smem:[#allocation10]]  ;;  %s468_s14 = sld [smem:[#allocation7 + $0x2]] }
  0x70   : > { %s469_s15 = sld [smem:[#allocation7 + $0x82]]  ;;  %s467_s19 = sld [smem:[#allocation10 + $0x80]] }
  0x71   : > { %s470_s17 = sld [smem:[#allocation8 + $0x2]]  ;;  %s471_s27 = sld [smem:[#allocation10 + $0x100]] }
  0x72   : > { %v286_v2 = vstv %s285_s8  ;;  %v300_v7 = vstv %s464_s24  ;;  %s329_s26 = sld [smem:[#allocation2]]  ;;  %s461_s9 = sshll.u32 %s894_s29, 3 }
  0x73   : > { %v287_v3 = vmul.f32 %v286_v2, %v282_v0  ;;  %v289_v4 = vstv %s463_s16  ;;  %v303_v8 = vstv %s465_s12  ;;  %v301_v10 = vmul.f32 %v300_v7, %v282_v0  ;;  %s281_s10 = scalar_lea.vmem [#allocation11], %s461_s9  ;;  %s473_s8 = sshll.u32 %s769_s4, 7 }
  0x74   : > { %v290_v5 = vmul.f32 %v462_v1, %v289_v4  ;;  %v293_v6 = vstv %s292_s18  ;;  %v304_v11 = vmul.f32 %v462_v1, %v303_v8  ;;  %v307_v12 = vstv %s466_s11  ;;  %s347_s13 = sshll.u32 %s281_s10, 4  ;;  %s920_s24 = scalar_lea.hbm %s967_s5, %s473_s8  ;;  %s915_s13 = int_to_ptr.vmem [resolvable:$true] %s347_s13 }
  0x75   : > { %v315_v13 = vstv %s468_s14  ;;  %v297_v19 = vstv %s910_s30  ;;  %s334_s12 = scalar_lea.sflag [#allocation5], %s894_s29  ;;  %s631_s30 = scalar_lea.vmem %s915_s13, 128 }
  0x76   : > { %v291_v9 = vadd.f32 %v290_v5, %v287_v3  ;;  %v318_v14 = vstv %s469_s15  ;;  %v305_v16 = vadd.f32 %v304_v11, %v301_v10  ;;  %v316_v17 = vmul.f32 %v315_v13, %v282_v0  ;;  %p632_p0 = scmp.ne.s32.totalorder %s915_s13, %s631_s30  ;;  %p987_p1 = scmp.ne.s32.totalorder %s975_s6, 0 }
  0x77   : > { %v319_v18 = vmul.f32 %v462_v1, %v318_v14  ;;  %v322_v20 = vstv %s470_s17  ;;  %v311_v24 = vstv %s467_s19  ;;  %v326_v28 = vstv %s471_s27  ;;  %s714_s4 = smov [#allocation11]  }
  0x78   : > { %v294_v15 = vadd.f32 %v293_v6, %v291_v9  ;;  %v308_v22 = vadd.f32 %v307_v12, %v305_v16  ;;  %v330_v33 = vstv %s329_s26  ;;  %p633_p5 = pnand %p632_p0, %p987_p1  ;;  %s635_s11 = sshll.u32 %s714_s4, 4  ;;  %s636_s11 = int_to_ptr.vmem [resolvable:$false] %s635_s11 }
  0x79   : > { %v320_v23 = vadd.f32 %v319_v18, %v316_v17  ;;  %s637_s14 = scalar_lea.vmem %s636_s11, 256  ;;  %p638_p6 = scmp.lt.s32.totalorder %s915_s13, %s636_s11 }
  0x7a   : > { %v295_v21 = vmax.f32 %v294_v15, 0.0  ;;  %v309_v26 = vmax.f32 %v308_v22, 0.0  ;;  %p634_p2 = pneg %p633_p5  ;;  %p639_p3 = scmp.lt.s32.totalorder %s637_s14, %s631_s30 }
  0x7b   : > { %v323_v27 = vadd.f32 %v322_v20, %v320_v23 }
  0x7c   : > { %v298_v25 = vmul.f32 %v297_v19, %v295_v21  ;;  %v312_v29 = vmul.f32 %v311_v24, %v309_v26  ;;  %p640_p8 = por %p639_p3, %p638_p6 }
  0x7d   : > { %v324_v30 = vmax.f32 %v323_v27, 0.0 }
  0x7e   : > { %v313_v31 = vadd.f32 %v312_v29, %v298_v25  ;;  %p641_p10 = pnand %p640_p8, %p634_p2 }
  0x7f   : > { %v327_v32 = vmul.f32 %v326_v28, %v324_v30 }
  0x81   : > { %v328_v34 = vadd.f32 %v327_v32, %v313_v31 }
  0x83   : > { %v331_v35 = vadd.f32 %v330_v33, %v328_v34 }
  0x85   : > { %332 = vst [vmem:[%s281_s10] sm:$0xff] %v331_v35 }
  0x86   : > { %644 = shalt.err (!%p641_p10)
}
  0x87   : > { %s645_s29 = scalar_lea.hbm %s920_s24, 128  ;;  %s649_s19 = scalar_lea.hbm %s967_s5, 256 }
  0x88   : > { %p646_p7 = scmp.ne.s32.totalorder %s920_s24, %s645_s29  ;;  %p650_p13 = scmp.lt.u32.totalorder %s920_s24, %s967_s5 }
  0x89   : > { %p651_p12 = scmp.lt.u32.totalorder %s649_s19, %s645_s29  ;;  %p653_p0 = scmp.lt.u32.totalorder %s645_s29, %s920_s24 }
  0x8a   : > { %p647_p9 = pnand %p646_p7, %p987_p1 }
  0x8b   : > { %p652_p11 = por %p651_p12, %p650_p13 }
  0x8c   : > { %p648_p4 = pneg %p647_p9 }
  0x8d   : > { %p654_p5 = por %p653_p0, %p652_p11 }
  0x8f   : > { %p655_p2 = pnand %p654_p5, %p648_p4 }
  0x91   : > { %658 = shalt.err (!%p655_p2)
}
  0x92   : > { %490 = dma.vmem_to_hbm [thread:$0]  (%p987_p1), %s915_s13, 128, %s920_s24, %s334_s12  }
  0x93 PF: > { %s359_s9 = sand.u32 1, %s693_s20   ;;  %p988_p6 = scmp.ne.s32.totalorder %s976_s7, 0 }
  0x94   : > { %p989_p3 = scmp.ge.s32.totalorder %s705_s23, 2  ;;  %s360_s10 = scalar_lea.sflag [#allocation5], %s359_s9 }
  0x96   : > { %p507_p8 = pnand %p989_p3, %p988_p6 }
  0x98   : > { %688 = dma.done.wait (!%p507_p8), %s360_s10, 128  }
  0x99   : > { %690 = vsyncadd (!%p507_p8), %s360_s10, 4294967168  ;;  %p21_p10 = scmp.ge.s32.totalorder %s773_s25, 4   ;;  %s990_s20 = smov %s697_s21 }
  0x9a   : > { %s991_s21 = smov %s701_s22  ;;  %s992_s22 = smov %s785_s28 }
  0x9b   : > { %s993_s23 = smov %s773_s25  ;;  %23 = sbr.rel (!%p21_p10) target bundleno = 9 (0x9), region = 99 }
  0xa2   :  { %365 = vsyncpa [#allocation4], 1 }
  0xa3   :  { %367 = vsyncpa [#allocation4 + $0x1], 1 }
  0xa4   :  { %368 = vsyncpa [#allocation5], 1 }
  0xa5   :  { %370 = vsyncpa [#allocation5 + $0x1], 1 }
  0xa6   :  { %371 = vsyncpa [#allocation6], 1 }
  0xa7   :  { %373 = vsyncpa [#allocation6 + $0x1], 1 }
  0xa8   :  { %374 = vsyncpa [#allocation9], 1 }

</bundles_post_ra>
